<compile_context>
chip_gen: v5e
topology: v5e:2x2
jax: 0.10.0
libtpu: 0.0.40
codegen_flags: <defaults>
</compile_context>

<pallas_src>
import jax
import jax.numpy as jnp
from jax.experimental import pallas as pl
from jax.experimental.pallas import tpu as pltpu


# ----------------------------- Pallas kernel -------------------------------

def hybrid_embed_kernel(patch_ref, wconv_ref, bconv_ref, wproj_ref, bproj_ref,
                        out_ref):
    # patch_ref : (TILE_M, K)  bf16   im2col'd input rows (flattened N*P)
    # wconv_ref : (K, F)       bf16   conv weight, (C,kh,kw)-flattened
    # bconv_ref : (1, F)       f32    conv bias
    # wproj_ref : (F, E)       bf16   Linear weight (transposed)
    # bproj_ref : (1, E)       f32    Linear bias
    # out_ref   : (TILE_M, E)  out dtype

    # Backbone conv (as matmul, f32 accumulation on the MXU) + bias + ReLU (f32 VPU).
    feat = jnp.dot(patch_ref[...], wconv_ref[...],
                   preferred_element_type=jnp.float32)          # (TILE_M, F) f32
    feat = jnp.maximum(feat + bconv_ref[...], 0.0)

    # Projection: nn.Linear(feature_dim, embed_dim); bf16 operand, f32 accum.
    out = jnp.dot(feat.astype(wproj_ref.dtype), wproj_ref[...],
                  preferred_element_type=jnp.float32)           # (TILE_M, E) f32
    out_ref[...] = (out + bproj_ref[...]).astype(out_ref.dtype)


# ----------------------------- wrapper --------------------------------------

def _round_up(x, m):
    return (x + m - 1) // m * m


def _choose_tile_m(M, requested):
    """Pick a legal (multiple-of-8) M tile; keep >= 2 tiles when M allows it so
    the 'parallel' axis can shard across v7x's two TensorCores."""
    tile = min(requested, _round_up(M, 8))
    tile = max(8, tile - tile % 8)
    while tile > 8 and pl.cdiv(M, tile) < 2:
        tile = max(8, (tile // 2) - (tile // 2) % 8)
    return tile


def hybrid_embed(x_nchw, wconv, bconv, wproj, bproj, *, patch=4,
                 tile_m=1024, compute_dtype=jnp.bfloat16):
    """x_nchw: (N, C, H, W).  Returns (N, P, embed_dim) in x_nchw.dtype."""
    N, C, H, W = x_nchw.shape
    nh, nw = H // patch, W // patch
    P = nh * nw
    K = C * patch * patch
    F = wconv.shape[1]
    E = wproj.shape[1]
    M = N * P

    tm = _choose_tile_m(M, tile_m)
    Mp = _round_up(M, tm)
    grid_m = Mp // tm

    # --- glue: im2col + bf16 cast as ONE XLA fusion (no HBM zero-pad pass) ---
    # NCHW -> (N, nh, nw, C, kh, kw) -> (M, K), K ordered (C, kh, kw).
    xp = x_nchw.reshape(N, C, nh, patch, nw, patch)
    xp = jnp.transpose(xp, (0, 2, 4, 1, 3, 5)).reshape(M, K).astype(compute_dtype)
    if Mp != M:  # only pad M when the tile doesn't divide it
        xp = jnp.pad(xp, ((0, Mp - M), (0, 0)))

    wconv_c = wconv.astype(compute_dtype)               # (K, F)
    wproj_c = wproj.astype(compute_dtype)               # (F, E)
    bconv_r = bconv.astype(jnp.float32).reshape(1, F)
    bproj_r = bproj.astype(jnp.float32).reshape(1, E)

    n_buf = 3 if grid_m >= 3 else 2

    out = pl.pallas_call(
        hybrid_embed_kernel,
        out_shape=jax.ShapeDtypeStruct((Mp, E), x_nchw.dtype),
        grid_spec=pltpu.PrefetchScalarGridSpec(
            num_scalar_prefetch=0,
            grid=(grid_m,),
            in_specs=[
                # Row-tiles of the flattened (N*P) x K patch matrix;
                # deeper pipelining to hide HBM latency at tile boundaries.
                pl.BlockSpec((tm, K), lambda m: (m, 0),
                             pipeline_mode=pl.Buffered(n_buf)),
                # Grid-invariant weights/biases: resident in VMEM, single copy.
                pl.BlockSpec(memory_space=pltpu.MemorySpace.VMEM),
                pl.BlockSpec(memory_space=pltpu.MemorySpace.VMEM),
                pl.BlockSpec(memory_space=pltpu.MemorySpace.VMEM),
                pl.BlockSpec(memory_space=pltpu.MemorySpace.VMEM),
            ],
            out_specs=pl.BlockSpec((tm, E), lambda m: (m, 0)),
        ),
        compiler_params=pltpu.CompilerParams(
            dimension_semantics=("parallel",),
            vmem_limit_bytes=32 * 1024 * 1024,
        ),
    )(xp, wconv_c, bconv_r, wproj_c, bproj_r)

    return out[:M].reshape(N, P, E)


# ----------------------------- reference (plain JAX, f32) -------------------

def hybrid_embed_ref(x_nchw, wconv, bconv, wproj, bproj, *, patch=4):
    N, C, H, W = x_nchw.shape
    nh, nw = H // patch, W // patch
    xp = x_nchw.reshape(N, C, nh, patch, nw, patch)
    xp = jnp.transpose(xp, (0, 2, 4, 1, 3, 5)).reshape(N, nh * nw, -1)
    feat = jnp.maximum(xp @ wconv + bconv[None, None, :], 0.0)
    return feat @ wproj + bproj[None, None, :]


# ----------------------------- main -----------------------------------------

if __name__ == "__main__":
    # Small shapes consistent with the module's forward:
    #   batch=2, in_chans=4, img_size=16 -> feature map 4x4, feature_dim=16
    #   num_patches = 16, embed_dim = 32
    N, C, H, W = 2, 4, 16, 16
    patch = 4
    feature_dim = 16
    embed_dim = 32
    K = C * patch * patch

    key = jax.random.PRNGKey(0)
    kx, kw1, kb1, kw2, kb2 = jax.random.split(key, 5)

    x = jax.random.normal(kx, (N, C, H, W), dtype=jnp.float32)

    # Backbone conv weight, PyTorch layout (F, C, kh, kw) -> flattened (K, F)
    wconv_t = jax.random.normal(kw1, (feature_dim, C, patch, patch),
                                dtype=jnp.float32) * 0.05
    wconv = wconv_t.reshape(feature_dim, K).T                 # (K, F)
    bconv = jax.random.normal(kb1, (feature_dim,), dtype=jnp.float32) * 0.05

    # self.proj = nn.Linear(feature_dim, embed_dim): weight (E, F) -> (F, E)
    wproj_t = jax.random.normal(kw2, (embed_dim, feature_dim),
                                dtype=jnp.float32) * 0.05
    wproj = wproj_t.T                                         # (F, E)
    bproj = jax.random.normal(kb2, (embed_dim,), dtype=jnp.float32) * 0.05

    out = hybrid_embed(x, wconv, bconv, wproj, bproj, patch=patch)
    out = jax.block_until_ready(out)

    ref = hybrid_embed_ref(x, wconv, bconv, wproj, bproj, patch=patch)
    assert out.shape == (N, (H // patch) * (W // patch), embed_dim)
    # bf16 MXU operands (f32 accumulation) -> slightly looser tolerance vs f32 ref.
    assert jnp.allclose(out, ref, atol=3e-2, rtol=3e-2), (
        float(jnp.max(jnp.abs(out - ref))))

    print("KERNEL_OK")
</pallas_src>

<mosaic_0001>
module attributes {stable_mosaic.version = 11 : i64} {
  func.func @hybrid_embed_kernel(%arg0: i32, %arg1: memref<16x64xbf16, #tpu.memory_space<vmem>>, %arg2: memref<64x16xbf16, #tpu.memory_space<vmem>>, %arg3: memref<1x16xf32, #tpu.memory_space<vmem>>, %arg4: memref<16x32xbf16, #tpu.memory_space<vmem>>, %arg5: memref<1x32xf32, #tpu.memory_space<vmem>>, %arg6: memref<16x32xf32, #tpu.memory_space<vmem>>) attributes {dimension_semantics = [#tpu.dimension_semantics<parallel>], iteration_bounds = array<i64: 2>, scalar_prefetch = 0 : i64, scratch_operands = 0 : i64, tpu.core_type = #tpu.core_type<tc>, window_params = [{pipeline_mode = #tpu.pipeline_mode<double_buffered>, transform_indices = @transform_0, window_bounds = array<i64: 16, 64>}, {pipeline_mode = #tpu.pipeline_mode<synchronous>, transform_indices = @transform_1, window_bounds = array<i64: 64, 16>}, {pipeline_mode = #tpu.pipeline_mode<synchronous>, transform_indices = @transform_2, window_bounds = array<i64: 1, 16>}, {pipeline_mode = #tpu.pipeline_mode<synchronous>, transform_indices = @transform_3, window_bounds = array<i64: 16, 32>}, {pipeline_mode = #tpu.pipeline_mode<synchronous>, transform_indices = @transform_4, window_bounds = array<i64: 1, 32>}, {transform_indices = @transform_5, window_bounds = array<i64: 16, 32>}]} {
    %c0 = arith.constant 0 : index
    %c0_0 = arith.constant 0 : index
    %0 = vector.load %arg1[%c0, %c0_0] : memref<16x64xbf16, #tpu.memory_space<vmem>>, vector<16x64xbf16>
    %c0_1 = arith.constant 0 : index
    %c0_2 = arith.constant 0 : index
    %1 = vector.load %arg2[%c0_1, %c0_2] : memref<64x16xbf16, #tpu.memory_space<vmem>>, vector<64x16xbf16>
    %cst = arith.constant dense<0.000000e+00> : vector<16x16xf32>
    %2 = tpu.matmul %0, %1, %cst {dimension_numbers = #tpu.dot_dimension_numbers<[1], [0], [0], [1], [0, 0, 1, 1], [], []>} : vector<16x64xbf16>, vector<64x16xbf16>, vector<16x16xf32> -> vector<16x16xf32>
    %c0_3 = arith.constant 0 : index
    %c0_4 = arith.constant 0 : index
    %3 = vector.load %arg3[%c0_3, %c0_4] : memref<1x16xf32, #tpu.memory_space<vmem>>, vector<1x16xf32>
    %4 = vector.broadcast %3 : vector<1x16xf32> to vector<16x16xf32>
    %5 = arith.addf %2, %4 : vector<16x16xf32>
    %cst_5 = arith.constant 0.000000e+00 : f32
    %6 = vector.broadcast %cst_5 : f32 to vector<16x16xf32>
    %7 = arith.maximumf %5, %6 : vector<16x16xf32>
    %8 = arith.truncf %7 : vector<16x16xf32> to vector<16x16xbf16>
    %c0_6 = arith.constant 0 : index
    %c0_7 = arith.constant 0 : index
    %9 = vector.load %arg4[%c0_6, %c0_7] : memref<16x32xbf16, #tpu.memory_space<vmem>>, vector<16x32xbf16>
    %cst_8 = arith.constant dense<0.000000e+00> : vector<16x32xf32>
    %10 = tpu.matmul %8, %9, %cst_8 {dimension_numbers = #tpu.dot_dimension_numbers<[1], [0], [0], [1], [0, 0, 1, 1], [], []>} : vector<16x16xbf16>, vector<16x32xbf16>, vector<16x32xf32> -> vector<16x32xf32>
    %c0_9 = arith.constant 0 : index
    %c0_10 = arith.constant 0 : index
    %11 = vector.load %arg5[%c0_9, %c0_10] : memref<1x32xf32, #tpu.memory_space<vmem>>, vector<1x32xf32>
    %12 = vector.broadcast %11 : vector<1x32xf32> to vector<16x32xf32>
    %13 = arith.addf %10, %12 : vector<16x32xf32>
    %c0_11 = arith.constant 0 : index
    %c0_12 = arith.constant 0 : index
    %14 = vector.load %arg6[%c0_11, %c0_12] : memref<16x32xf32, #tpu.memory_space<vmem>>, vector<16x32xf32>
    tpu.vector_store %arg6[%c0_11, %c0_12], %13 {strides = array<i32>} : memref<16x32xf32, #tpu.memory_space<vmem>>, vector<16x32xf32>,
    return
  }
  func.func @transform_0(%arg0: i32) -> (i32, i32) {
    %c0_i32 = arith.constant 0 : i32
    %c0_i32_0 = arith.constant 0 : i32
    return %arg0, %c0_i32 : i32, i32
  }
  func.func @transform_1(%arg0: i32) -> (i32, i32) {
    %c0_i32 = arith.constant 0 : i32
    %c0_i32_0 = arith.constant 0 : i32
    %c0_i32_1 = arith.constant 0 : i32
    return %c0_i32, %c0_i32_0 : i32, i32
  }
  func.func @transform_2(%arg0: i32) -> (i32, i32) {
    %c0_i32 = arith.constant 0 : i32
    %c0_i32_0 = arith.constant 0 : i32
    %c0_i32_1 = arith.constant 0 : i32
    return %c0_i32, %c0_i32_0 : i32, i32
  }
  func.func @transform_3(%arg0: i32) -> (i32, i32) {
    %c0_i32 = arith.constant 0 : i32
    %c0_i32_0 = arith.constant 0 : i32
    %c0_i32_1 = arith.constant 0 : i32
    return %c0_i32, %c0_i32_0 : i32, i32
  }
  func.func @transform_4(%arg0: i32) -> (i32, i32) {
    %c0_i32 = arith.constant 0 : i32
    %c0_i32_0 = arith.constant 0 : i32
    %c0_i32_1 = arith.constant 0 : i32
    return %c0_i32, %c0_i32_0 : i32, i32
  }
  func.func @transform_5(%arg0: i32) -> (i32, i32) {
    %c0_i32 = arith.constant 0 : i32
    %c0_i32_0 = arith.constant 0 : i32
    return %arg0, %c0_i32 : i32, i32
  }
}

</mosaic_0001>

<bundles_post_ra>
// kernel: tpu_custom_call.1
= control target key start
LH: loop header
LB: loop body
LE: loop exit
PB: predicated region body
PF: predicated region fallthrough
CT: control target
= control target key end

     0   :  { %10 = vsyncpa [#allocation3], 0  ;;  %s691_s0 = inlined_call_operand.vmem [shape: bf16[32,64], index: 0, kind: input, shape index: {}]   ;;  %s692_s1 = inlined_call_operand.vmem [shape: bf16[64,16], index: 1, kind: input, shape index: {}]   ;;  %s693_s2 = inlined_call_operand.vmem [shape: f32[1,16], index: 2, kind: input, shape index: {}]   ;;  %s694_s3 = inlined_call_operand.vmem [shape: bf16[16,32], index: 3, kind: input, shape index: {}]   ;;  %s695_s4 = inlined_call_operand.vmem [shape: f32[1,32], index: 4, kind: input, shape index: {}]   ;;  %s696_s5 = inlined_call_operand.hbm [shape: f32[32,32], index: 5, kind: output, shape index: {}]  }
   0x1   :  { %12 = vsyncpa [#allocation3 + $0x1], 0  ;;  %s586_s18 = smov 0   ;;  %s588_s19 = smov 0  }
   0x2   :  { %s590_s20 = smov 0   ;;  %s592_s21 = smov 0  }
   0x3 LB: > { %s607_s22 = sadd.s32 4294967295, %s552_s21   ;;  %s402_s23 = sadd.s32 4294967294, %s552_s21   ;;  %s552_s21 = sphi %s592_s21, %s702_s21   ;;  %s548_s20 = sphi %s590_s20, %s701_s20   ;;  %s544_s19 = sphi %s588_s19, %s700_s19   ;;  %s540_s18 = sphi %s586_s18, %s699_s18  }
   0x4   : > { %s611_s24 = sadd.s32 1, %s552_s21   ;;  %s135_s25 = sadd.s32 1, %s548_s20 }
   0x5   : > { %s132_s26 = ssub.s32 %s552_s21, %s611_s24  ;;  %p145_p0 = scmp.ne.s32.totalorder %s548_s20, %s544_s19 }
   0x6   : > { %p133_p1 = scmp.eq.s32.totalorder %s132_s26, 0  ;;  %p146_p2 = scmp.eq.s32.totalorder %s607_s22, 1 }
   0x7   : > { %p151_p3 = scmp.ne.s32.totalorder %s544_s19, %s540_s18  ;;  %p152_p4 = scmp.eq.s32.totalorder %s402_s23, 1 }
   0x8   : > { %s622_s27 = scalar_select %p133_p1, %s548_s20, %s135_s25  }
   0x9   : > { %p624_p5 = por %p146_p2, %p145_p0  ;;  %p628_p6 = por %p152_p4, %p151_p3 }
   0xa   : > { %p405_p7 = scmp.ge.s32.totalorder %s552_s21, 1  ;;  %p191_p8 = scmp.lt.s32.totalorder %s552_s21, 3 }
   0xc   : > { %p192_p9 = pnand %p405_p7, %p191_p8 }
   0xd   : > { %s407_s7 = sshll.u32 (!%p192_p9), %s607_s22, 1  ;;  %s216_s6 = sand.u32 (!%p192_p9), 1, %s544_s19  }
   0xe   : > { %195 = sbr.rel (%p192_p9) target bundleno = 315 (0x13b), region = 40  ;;  %p220_p10 = scmp.lt.s32.totalorder (!%p192_p9), %s407_s7, 3 }
   0xf   : > { %s446_s10 = sshll.u32 (!%p192_p9), %s607_s22, 4  ;;  %s510_s30 = scalar_lea.hbm (!%p192_p9), %s696_s5, 32 }
  0x10   : > { %s336_s13 = scalar_lea.hbm (!%p192_p9), %s696_s5, %s446_s10 }
  0x11   : > { %s339_s16 = sshll.u32 (!%p192_p9), %s336_s13, 4  ;;  %s340_s16 = int_to_ptr.hbm [resolvable:$true] %s339_s16 }
  0x12   : > { %s504_s23 = sshra.s32 (!%p192_p9), %s340_s16, 4  ;;  %s505_s23 = int_to_ptr.hbm [resolvable:$true] %s504_s23 }
  0x13   : > { %v444_v0 = vld [vmem:[%s692_s1 + $0x18] sm:$0xff]  ;;  %v443_v1 = vld [vmem:[%s692_s1 + $0x10] sm:$0xff]  ;;  %s704_s7 = smov (!%p220_p10, %s407_s7), 3  ;;  %v442_v2 = vld [vmem:[%s692_s1 + $0x8] sm:$0xff]  ;;  %vm270_vm0 = vcmask 523264   ;;  %vm303_vm1 = vcmask 130048   ;;  %p511_p0 = scmp.lt.s32.totalorder %s505_s23, %s696_s5 }
  0x14   : > { %278 = vmatpush.bf16.msra.mxu0 %v444_v0  ;;  %s408_s12 = sshll.u32 %s704_s7, 2  ;;  %v441_v3 = vld [vmem:[%s692_s1] sm:$0xff]  ;;  %s406_s7 = sshll.u32 %s216_s6, 4  ;;  %vm321_vm2 = vcmask 261120  }
  0x15   : > { %s223_s17 = scalar_lea.vmem %s691_s0, %s408_s12  ;;  %v445_v5 = vld [vmem:[%s694_s3] sm:$0xff]  ;;  %s218_s14 = scalar_lea.vmem [#allocation2], %s406_s7 }
  0x16   : > { %v440_v4 = vld [vmem:[%s223_s17] sm:$0xff]  ;;  %314 = vmatpush.bf16.msra.mxu1 %v445_v5  ;;  %s337_s15 = sshll.u32 %s218_s14, 4  ;;  %s325_s17 = scalar_lea.sflag [#allocation3], %s216_s6  ;;  %s338_s15 = int_to_ptr.vmem [resolvable:$true] %s337_s15 }
  0x17   : > { %v488_v7 = vld [vmem:[%s693_s2] ss:$0 sm:$0xff]  ;;  %s506_s22 = scalar_lea.hbm %s505_s23, 16 }
  0x18   : > { %279 = vmatpush.bf16.msra.mxu0 %v443_v1  ;;  %v489_v14 = vld [vmem:[%s695_s4] ss:$0 sm:$0xff]  ;;  %p507_p11 = scmp.ne.s32.totalorder %s505_s23, %s506_s22  ;;  %p512_p1 = scmp.lt.s32.totalorder %s510_s30, %s506_s22 }
  0x1a   : > { %p508_p12 = pnand %p507_p11, %p624_p5  ;;  %p513_p2 = por %p512_p1, %p511_p0 }
  0x1c   : > { %280 = vmatpush.bf16.msra.mxu0 %v442_v2  ;;  %p509_p13 = pneg %p508_p12 }
  0x1e   : > { %p514_p3 = pnand %p513_p2, %p509_p13 }
  0x20   : > { %281 = vmatpush.bf16.msra.mxu0 %v441_v3 }
  0x23   : > { %429 = vmatmul.msk.bf16.vlgmr.msra.gmra.mxu0 %vm270_vm0, %v440_v4 }
  0xa0   : > { %v283_v6 = vpop.f32.mrf.mxu0 }
  0xa1   : > { %v284_v8 = vadd.f32 %v488_v7, %v283_v6 }
  0xa3   : > { %v288_v11 = vmax.f32 %v284_v8, 0.0 }
  0xa8   : > { %v285_v9 = vpop.f32.mrf.mxu0 }
  0xa9   : > { %v286_v10 = vadd.f32 %v488_v7, %v285_v9 }
  0xab   : > { %v289_v12 = vmax.f32 %v286_v10, 0.0 }
  0xad   : > { %v290_v13 = vpack.c.bf16 %v289_v12, %v288_v11 }
  0xaf   : > { %434 = vmatmul.msk.bf16.vlgmr.msra.gmra.mxu1 %vm303_vm1, %v290_v13 }
 0x12c   : > { %v316_v15 = vpop.f32.mrf.mxu1 }
 0x12d   : > { %v317_v16 = vadd.f32 %v489_v14, %v316_v15 }
 0x12f   : > { %322 = vst.msk [vmem:[%s218_s14] sm:$0xff] %vm321_vm2, %v317_v16 }
 0x134   : > { %v318_v17 = vpop.f32.mrf.mxu1 }
 0x135   : > { %v319_v18 = vadd.f32 %v489_v14, %v318_v17 }
 0x137   : > { %323 = vst.msk [vmem:[%s218_s14 + $0x8] sm:$0xff] %vm321_vm2, %v319_v18 }
 0x138   : > { %517 = shalt.err (!%p514_p3)
}
 0x139   : > { %s554_s6 = smov 128   ;;  %s555_s9 = smov 8  }
 0x13a   : > { %447 = dma.vmem_to_hbm [thread:$0]  (%p624_p5), %s338_s15, 256, %s340_s16, %s325_s17, %s554_s6, %s554_s6, %s555_s9  }
 0x13b PF: > { %p453_p4 = scmp.ge.s32.totalorder %s552_s21, 2  ;;  %s354_s10 = sand.u32 1, %s540_s18  }
 0x13c   : > { %s355_s11 = scalar_lea.sflag [#allocation3], %s354_s10 }
 0x13d   : > { %p450_p7 = pnand %p453_p4, %p628_p6 }
 0x13f   : > { %p451_p8 = pneg %p450_p7 }
 0x141   : > { %535 = dma.done.wait (%p451_p8), %s355_s11, 256  }
 0x142   : > { %537 = vsyncadd (%p451_p8), %s355_s11, 4294967040  ;;  %p15_p9 = scmp.ge.s32.totalorder %s611_s24, 4   ;;  %s699_s18 = smov %s544_s19 }
 0x143   : > { %s700_s19 = smov %s548_s20  ;;  %s701_s20 = smov %s622_s27 }
 0x144   : > { %s702_s21 = smov %s611_s24  ;;  %17 = sbr.rel (!%p15_p9) target bundleno = 3 (0x3), region = 75 }
 0x149   :  { %361 = vsyncpa [#allocation3], 1 }
 0x14a   :  { %363 = vsyncpa [#allocation3 + $0x1], 1 }

</bundles_post_ra>
